<compile_context>
chip_gen: v5e
topology: v5e:2x2
jax: 0.10.0
libtpu: 0.0.40
codegen_flags: <defaults>
</compile_context>

<pallas_src>
import functools

import jax
import jax.numpy as jnp
from jax.experimental import pallas as pl
from jax.experimental.pallas import tpu as pltpu

CHANNEL_DIM = 120
TIME_REDUCE = 1
EDGE_C = CHANNEL_DIM * TIME_REDUCE * 2   # 240, fixed by NodeModel's conv3/conv4


# --------------------------------------------------------------------------
# Kernel: one NodeModel.forward on an L-tile.
# --------------------------------------------------------------------------
def _node_model_kernel(edge_ref, w3_ref, b3_ref, w4_ref, b4_ref, o_ref, *, inv_len):
    """edge:(C,tl) f32, w3:(C,C) bf16, b3/w4:(C,1) f32, b4:(1,1) f32
    -> o:(node_num, tl) f32 (all rows identical by construction)."""
    # conv3 (1x1 Conv1d) + ReLU: one MXU matmul, bf16 operands, f32 accumulate.
    e = jnp.dot(w3_ref[...], edge_ref[...].astype(jnp.bfloat16),
                preferred_element_type=jnp.float32)
    e = jnp.maximum(e + b3_ref[...], 0.0)                                # (C, tl)
    # conv4 (C -> 1) + sigmoid as a sublane reduction (XLU slot; MXU stays free).
    rel = jax.nn.sigmoid(jnp.sum(e * w4_ref[...], axis=0, keepdims=True)
                         + b4_ref[...])                                  # (1, tl)
    # edge2node: ones(node_num, C) @ (e + e*rel) / L  ==  every row equal to
    #   (1 + rel[l]) * sum_c e[c, l] / L        (lane-dense row, then broadcast)
    row = jnp.sum(e, axis=0, keepdims=True) * (1.0 + rel) * inv_len      # (1, tl)
    o_ref[...] = jnp.broadcast_to(row, o_ref.shape)


# --------------------------------------------------------------------------
# Host-side helpers.
# --------------------------------------------------------------------------
def _pick_l_tile(length, node_num, c):
    """Pick an L-tile that divides L, is lane-legal (multiple of 128 or the
    full extent) and keeps the per-step VMEM footprint modest."""
    budget = 12 * 1024 * 1024                     # per-step working-set budget
    per_row = (2 * c + node_num) * 4              # edge + conv3 result + out, f32
    max_tl = max(128, budget // max(per_row, 1))
    if length <= max_tl:
        return length
    t = (max_tl // 128) * 128
    while t >= 128:
        if length % t == 0:
            return t
        t -= 128
    # TODO(synk): for L > budget with no 128-multiple divisor, fall back to a
    # single whole-L block (a masked tail block would need explicit masking).
    return length


def prepare_decoder_params(params):
    """One-time re-layout: only the LAST global-GNN layer is live, so only its
    conv3/conv4 weights are handed to the kernel (conv3 pre-cast to bf16)."""
    last = params["global_gnn"][-1]
    return {
        "w3": last["w3"].astype(jnp.bfloat16),                     # (C, C)
        "b3": last["b3"].reshape(-1, 1).astype(jnp.float32),       # (C, 1)
        "w4": last["w4"].reshape(-1, 1).astype(jnp.float32),       # (C, 1)
        "b4": last["b4"].reshape(1, 1).astype(jnp.float32),        # (1, 1)
    }


def decoder_forward(prep_params, x, trans_w, g_edge_index, g_edge_w,
                    edge_index, edge_w, *, city_num, group_num, gnn_layer):
    """DecoderModule.forward, reduced to its live subgraph, as one pallas_call."""
    assert gnn_layer >= 1, "DecoderModule needs at least one GNN layer"
    # TODO(synk): NodeModel ignores its node-feature input and both edge_index
    # arguments, so x_embed, both trans_w bmm stages, the whole group GNN and
    # all but the last global GNN layer (and their operands) never influence
    # the output; they are intentionally neither computed nor DMA'd.
    del trans_w, g_edge_index, g_edge_w, edge_index

    node_num = x.shape[0]                # == batch * city_num (only live use of x)
    assert node_num % city_num == 0
    c, length = edge_w.shape
    assert c == prep_params["w3"].shape[0]

    tl = _pick_l_tile(length, node_num, c)
    grid = (length // tl,)

    # VMEM budget derived from the actual live buffers (double-buffered tiles),
    # capped below v7x's 64 MiB physical VMEM.
    live_bytes = (
        2 * c * tl * 4              # edge tile (f32), double-buffered
        + c * c * 2                 # resident conv3 weight (bf16)
        + (2 * c + 1) * 4           # b3 / w4 columns + b4
        + 2 * node_num * tl * 4     # output tile, double-buffered
        + 2 * c * tl * 4            # conv3 result + elementwise headroom
    )
    vmem_limit = int(min(48 * 1024 * 1024, max(16 * 1024 * 1024, 2 * live_bytes)))

    kernel = functools.partial(_node_model_kernel, inv_len=1.0 / float(length))
    return pl.pallas_call(
        kernel,
        out_shape=jax.ShapeDtypeStruct((node_num, length), jnp.float32),
        grid_spec=pltpu.PrefetchScalarGridSpec(
            num_scalar_prefetch=0,
            grid=grid,
            in_specs=[
                pl.BlockSpec((c, tl), lambda i: (0, i)),     # edge_w tile
                pl.BlockSpec((c, c), lambda i: (0, 0)),      # conv3 weight (resident)
                pl.BlockSpec((c, 1), lambda i: (0, 0)),      # conv3 bias
                pl.BlockSpec((c, 1), lambda i: (0, 0)),      # conv4 weight
                pl.BlockSpec((1, 1), lambda i: (0, 0)),      # conv4 bias
            ],
            out_specs=pl.BlockSpec((node_num, tl), lambda i: (0, i)),
        ),
        compiler_params=pltpu.CompilerParams(
            dimension_semantics=("parallel",),
            vmem_limit_bytes=vmem_limit),
    )(edge_w, prep_params["w3"], prep_params["b3"],
      prep_params["w4"], prep_params["b4"])


# --------------------------------------------------------------------------
# Deterministic parameter init (full module, so the reference can run).
# --------------------------------------------------------------------------
def init_node_model_params(key, c=EDGE_C):
    k1, k2, k3, k4 = jax.random.split(key, 4)
    s = 0.05
    # TODO(synk): node_mlp_1/2, bn3 and conv5 of NodeModel never run in
    # forward(), so they are not instantiated.
    return {
        "w3": jax.random.normal(k1, (c, c), jnp.float32) * s,   # conv3 (C_out, C_in)
        "b3": jax.random.normal(k2, (c,), jnp.float32) * s,     # conv3 bias
        "w4": jax.random.normal(k3, (c,), jnp.float32) * s,     # conv4 (1, C_in)
        "b4": jax.random.normal(k4, (1,), jnp.float32) * s,     # conv4 bias
    }


def init_decoder_params(key, x_em, gnn_h, gnn_layer):
    keys = jax.random.split(key, 2 + 2 * gnn_layer)
    return {
        "x_embed_w": jax.random.normal(keys[0], (gnn_h, x_em), jnp.float32) * 0.05,
        "x_embed_b": jax.random.normal(keys[1], (x_em,), jnp.float32) * 0.05,
        "group_gnn": [init_node_model_params(keys[2 + i]) for i in range(gnn_layer)],
        "global_gnn": [init_node_model_params(keys[2 + gnn_layer + i])
                       for i in range(gnn_layer)],
    }


# --------------------------------------------------------------------------
# Pure-JAX reference (direct transcription of the PyTorch forward).
# --------------------------------------------------------------------------
def _reference_forward(params, x, trans_w, g_edge_w, edge_w,
                       *, city_num, group_num, gnn_layer):
    hp = jax.lax.Precision.HIGHEST

    def node_model(p, node_num, edge):                 # edge: (C, L) channel-first
        e = jax.nn.relu(jnp.dot(p["w3"], edge, precision=hp) + p["b3"][:, None])
        rel = jax.nn.sigmoid(jnp.dot(p["w4"][None, :], e, precision=hp)
                             + p["b4"][:, None])
        e = e + e * rel
        incoming = jnp.dot(jnp.ones((node_num, e.shape[0]), jnp.float32), e,
                           precision=hp)
        return incoming / incoming.shape[1]

    x = jnp.dot(x, params["x_embed_w"], precision=hp) + params["x_embed_b"]
    x = x.reshape(-1, city_num, x.shape[-1])
    bsz = x.shape[0]
    w1 = jnp.broadcast_to(trans_w.T[None], (bsz, group_num, city_num))
    g_x = jnp.einsum("bgc,bcx->bgx", w1, x, precision=hp).reshape(-1, x.shape[-1])
    for i in range(gnn_layer):
        g_x = node_model(params["group_gnn"][i], g_x.shape[0], g_edge_w)
    g_x = g_x.reshape(-1, group_num, g_x.shape[-1])
    w2 = jnp.broadcast_to(trans_w[None], (bsz, city_num, group_num))
    new_x = jnp.einsum("bcg,bgl->bcl", w2, g_x, precision=hp)
    new_x = jnp.concatenate([x, new_x], axis=-1).reshape(bsz * city_num, -1)
    for i in range(gnn_layer):
        new_x = node_model(params["global_gnn"][i], new_x.shape[0], edge_w)
    return new_x


if __name__ == "__main__":
    B, city_num, group_num = 2, 4, 2
    gnn_h, x_em, gnn_layer = 32, 16, 2
    Lg, Le = 8, 8   # spatial length of the (240, L) edge-attribute tensors

    key = jax.random.PRNGKey(0)
    k_par, k_x, k_w, k_ge, k_e = jax.random.split(key, 5)

    params = init_decoder_params(k_par, x_em, gnn_h, gnn_layer)
    prep = prepare_decoder_params(params)        # one-time (last-layer) re-layout

    x = jax.random.normal(k_x, (B * city_num, gnn_h), jnp.float32)
    trans_w = jax.random.uniform(k_w, (city_num, group_num), jnp.float32)
    g_edge_w = jax.random.normal(k_ge, (EDGE_C, Lg), jnp.float32)
    edge_w = jax.random.normal(k_e, (EDGE_C, Le), jnp.float32)
    g_edge_index = jnp.zeros((2, 4), jnp.int32)  # accepted but unused (as in reference)
    edge_index = jnp.zeros((2, 4), jnp.int32)

    fwd = jax.jit(decoder_forward,
                  static_argnames=("city_num", "group_num", "gnn_layer"))
    out = fwd(prep, x, trans_w, g_edge_index, g_edge_w, edge_index, edge_w,
              city_num=city_num, group_num=group_num, gnn_layer=gnn_layer)
    out = jax.block_until_ready(out)

    assert out.shape == (B * city_num, Le), out.shape
    assert out.dtype == jnp.float32
    assert bool(jnp.all(jnp.isfinite(out)))

    ref = _reference_forward(params, x, trans_w, g_edge_w, edge_w,
                             city_num=city_num, group_num=group_num,
                             gnn_layer=gnn_layer)
    max_err = float(jnp.max(jnp.abs(out - ref)))
    assert jnp.allclose(out, ref, rtol=2e-2, atol=2e-2), max_err

    print("KERNEL_OK")
</pallas_src>

<mosaic_0001>
module attributes {stable_mosaic.version = 11 : i64} {
  func.func @_node_model_kernel(%arg0: i32, %arg1: memref<240x8xf32, #tpu.memory_space<vmem>>, %arg2: memref<240x240xbf16, #tpu.memory_space<vmem>>, %arg3: memref<240x1xf32, #tpu.memory_space<vmem>>, %arg4: memref<240x1xf32, #tpu.memory_space<vmem>>, %arg5: memref<1x1xf32, #tpu.memory_space<vmem>>, %arg6: memref<8x8xf32, #tpu.memory_space<vmem>>) attributes {dimension_semantics = [#tpu.dimension_semantics<parallel>], iteration_bounds = array<i64: 1>, scalar_prefetch = 0 : i64, scratch_operands = 0 : i64, tpu.core_type = #tpu.core_type<tc>, window_params = [{transform_indices = @transform_0, window_bounds = array<i64: 240, 8>}, {pipeline_mode = #tpu.pipeline_mode<synchronous>, transform_indices = @transform_1, window_bounds = array<i64: 240, 240>}, {pipeline_mode = #tpu.pipeline_mode<synchronous>, transform_indices = @transform_2, window_bounds = array<i64: 240, 1>}, {pipeline_mode = #tpu.pipeline_mode<synchronous>, transform_indices = @transform_3, window_bounds = array<i64: 240, 1>}, {pipeline_mode = #tpu.pipeline_mode<synchronous>, transform_indices = @transform_4, window_bounds = array<i64: 1, 1>}, {transform_indices = @transform_5, window_bounds = array<i64: 8, 8>}]} {
    %c0 = arith.constant 0 : index
    %c0_0 = arith.constant 0 : index
    %0 = vector.load %arg2[%c0, %c0_0] : memref<240x240xbf16, #tpu.memory_space<vmem>>, vector<240x240xbf16>
    %c0_1 = arith.constant 0 : index
    %c0_2 = arith.constant 0 : index
    %1 = vector.load %arg1[%c0_1, %c0_2] : memref<240x8xf32, #tpu.memory_space<vmem>>, vector<240x8xf32>
    %2 = arith.truncf %1 : vector<240x8xf32> to vector<240x8xbf16>
    %cst = arith.constant dense<0.000000e+00> : vector<240x8xf32>
    %3 = tpu.matmul %0, %2, %cst {dimension_numbers = #tpu.dot_dimension_numbers<[1], [0], [0], [1], [0, 0, 1, 1], [], []>} : vector<240x240xbf16>, vector<240x8xbf16>, vector<240x8xf32> -> vector<240x8xf32>
    %c0_3 = arith.constant 0 : index
    %c0_4 = arith.constant 0 : index
    %4 = vector.load %arg3[%c0_3, %c0_4] : memref<240x1xf32, #tpu.memory_space<vmem>>, vector<240x1xf32>
    %5 = vector.broadcast %4 : vector<240x1xf32> to vector<240x8xf32>
    %6 = arith.addf %3, %5 : vector<240x8xf32>
    %cst_5 = arith.constant 0.000000e+00 : f32
    %7 = vector.broadcast %cst_5 : f32 to vector<240x8xf32>
    %8 = arith.maximumf %6, %7 : vector<240x8xf32>
    %c0_6 = arith.constant 0 : index
    %c0_7 = arith.constant 0 : index
    %9 = vector.load %arg4[%c0_6, %c0_7] : memref<240x1xf32, #tpu.memory_space<vmem>>, vector<240x1xf32>
    %10 = vector.broadcast %9 : vector<240x1xf32> to vector<240x8xf32>
    %11 = arith.mulf %8, %10 : vector<240x8xf32>
    %cst_8 = arith.constant dense<0.000000e+00> : vector<8xf32>
    %12 = vector.multi_reduction <add>, %11, %cst_8 [0] : vector<240x8xf32> to vector<8xf32>
    %13 = vector.shape_cast %12 : vector<8xf32> to vector<1x8xf32>
    %c0_9 = arith.constant 0 : index
    %c0_10 = arith.constant 0 : index
    %14 = vector.load %arg5[%c0_9, %c0_10] : memref<1x1xf32, #tpu.memory_space<vmem>>, vector<1x1xf32>
    %15 = vector.broadcast %14 : vector<1x1xf32> to vector<1x8xf32>
    %16 = arith.addf %13, %15 : vector<1x8xf32>
    %17 = arith.negf %16 : vector<1x8xf32>
    %18 = math.exp %17 : vector<1x8xf32>
    %cst_11 = arith.constant 1.000000e+00 : f32
    %19 = vector.broadcast %cst_11 : f32 to vector<1x8xf32>
    %20 = arith.addf %19, %18 : vector<1x8xf32>
    %21 = arith.divf %19, %20 : vector<1x8xf32>
    %cst_12 = arith.constant dense<0.000000e+00> : vector<8xf32>
    %22 = vector.multi_reduction <add>, %8, %cst_12 [0] : vector<240x8xf32> to vector<8xf32>
    %23 = vector.shape_cast %22 : vector<8xf32> to vector<1x8xf32>
    %cst_13 = arith.constant 1.000000e+00 : f32
    %24 = vector.broadcast %cst_13 : f32 to vector<1x8xf32>
    %25 = arith.addf %24, %21 : vector<1x8xf32>
    %26 = arith.mulf %23, %25 : vector<1x8xf32>
    %cst_14 = arith.constant 1.250000e-01 : f32
    %27 = vector.broadcast %cst_14 : f32 to vector<1x8xf32>
    %28 = arith.mulf %26, %27 : vector<1x8xf32>
    %29 = vector.shape_cast %28 : vector<1x8xf32> to vector<1x8xf32>
    %30 = vector.broadcast %29 : vector<1x8xf32> to vector<8x8xf32>
    %c0_15 = arith.constant 0 : index
    %c0_16 = arith.constant 0 : index
    %31 = vector.load %arg6[%c0_15, %c0_16] : memref<8x8xf32, #tpu.memory_space<vmem>>, vector<8x8xf32>
    tpu.vector_store %arg6[%c0_15, %c0_16], %30 {strides = array<i32>} : memref<8x8xf32, #tpu.memory_space<vmem>>, vector<8x8xf32>,
    return
  }
  func.func @transform_0(%arg0: i32) -> (i32, i32) {
    %c0_i32 = arith.constant 0 : i32
    %c0_i32_0 = arith.constant 0 : i32
    return %c0_i32, %arg0 : i32, i32
  }
  func.func @transform_1(%arg0: i32) -> (i32, i32) {
    %c0_i32 = arith.constant 0 : i32
    %c0_i32_0 = arith.constant 0 : i32
    %c0_i32_1 = arith.constant 0 : i32
    return %c0_i32, %c0_i32_0 : i32, i32
  }
  func.func @transform_2(%arg0: i32) -> (i32, i32) {
    %c0_i32 = arith.constant 0 : i32
    %c0_i32_0 = arith.constant 0 : i32
    %c0_i32_1 = arith.constant 0 : i32
    return %c0_i32, %c0_i32_0 : i32, i32
  }
  func.func @transform_3(%arg0: i32) -> (i32, i32) {
    %c0_i32 = arith.constant 0 : i32
    %c0_i32_0 = arith.constant 0 : i32
    %c0_i32_1 = arith.constant 0 : i32
    return %c0_i32, %c0_i32_0 : i32, i32
  }
  func.func @transform_4(%arg0: i32) -> (i32, i32) {
    %c0_i32 = arith.constant 0 : i32
    %c0_i32_0 = arith.constant 0 : i32
    %c0_i32_1 = arith.constant 0 : i32
    return %c0_i32, %c0_i32_0 : i32, i32
  }
  func.func @transform_5(%arg0: i32) -> (i32, i32) {
    %c0_i32 = arith.constant 0 : i32
    %c0_i32_0 = arith.constant 0 : i32
    return %c0_i32, %arg0 : i32, i32
  }
}

</mosaic_0001>

<bundles_post_ra>
// kernel: decoder_forward.1
= control target key start
LH: loop header
LB: loop body
LE: loop exit
PB: predicated region body
PF: predicated region fallthrough
CT: control target
= control target key end

     0   :  { %s1982_s0 = inlined_call_operand.vmem [shape: f32[240,8], index: 0, kind: input, shape index: {}]   ;;  %s1983_s1 = inlined_call_operand.vmem [shape: bf16[240,240], index: 1, kind: input, shape index: {}]   ;;  %s1984_s2 = inlined_call_operand.vmem [shape: f32[240,1], index: 2, kind: input, shape index: {}]   ;;  %s1985_s3 = inlined_call_operand.vmem [shape: f32[240,1], index: 3, kind: input, shape index: {}]   ;;  %s1986_s4 = inlined_call_operand.<no memory space> [shape: f32[1,1], index: 4, kind: input, shape index: {}]   ;;  %s1987_s5 = inlined_call_operand.hbm [shape: f32[8,8], index: 5, kind: output, shape index: {}]  }
   0x1   :  { %v10_v0 = vstv %s1986_s4 }
   0x2   :  { %11 = vst [vmem:[#allocation2] sm:$0x1] %v10_v0 }
   0x3   :  { %v103_v1 = vld [vmem:[%s1984_s2 + $0x20] sm:$0xff]  ;;  %v101_v2 = vld [vmem:[%s1984_s2 + $0x10] sm:$0xff]  ;;  %v1262_v4 = vmov 0   ;;  %v69_v6 = vld [vmem:[%s1982_s0 + $0x78] sm:$0xff] }
   0x4   :  { %v99_v3 = vld [vmem:[%s1984_s2] sm:$0xff]  ;;  %1231 = vset.pattern.permute.xlu2 %v1262_v4  ;;  %1230 = vset.pattern.permute.xlu1 %v1262_v4  ;;  %v68_v5 = vld [vmem:[%s1982_s0 + $0x70] sm:$0xff]  ;;  %v83_v9 = vld [vmem:[%s1982_s0 + $0xe8] sm:$0xff] }
   0x5   :  { %v82_v7 = vld [vmem:[%s1982_s0 + $0xe0] sm:$0xff]  ;;  %1229 = vset.pattern.permute.xlu0 %v1262_v4  ;;  %151 = vperm.xlu2 %1231, %v103_v1   ;;  %v91_v8 = vpack.c.bf16 %v69_v6, %v68_v5  ;;  %v67_v11 = vld [vmem:[%s1982_s0 + $0x68] sm:$0xff]  ;;  %v80_v13 = vld [vmem:[%s1982_s0 + $0xd0] sm:$0xff] }
   0x6   :  { %v66_v10 = vld [vmem:[%s1982_s0 + $0x60] sm:$0xff]  ;;  %141 = vperm.xlu1 %1230, %v101_v2   ;;  %131 = vperm.xlu0 %1229, %v99_v3   ;;  %v98_v12 = vpack.c.bf16 %v83_v9, %v82_v7  ;;  %v81_v14 = vld [vmem:[%s1982_s0 + $0xd8] sm:$0xff]  ;;  %v64_v17 = vld [vmem:[%s1982_s0 + $0x50] sm:$0xff] }
   0x7   :  { %460 = vmatpush.bf16.msra.mxu0 %v91_v8  ;;  %1212 = vmatpush.bf16.msra.mxu2 %v91_v8  ;;  %v90_v15 = vpack.c.bf16 %v67_v11, %v66_v10  ;;  %v97_v16 = vpack.c.bf16 %v81_v14, %v80_v13  ;;  %v65_v18 = vld [vmem:[%s1982_s0 + $0x58] sm:$0xff]  ;;  %v78_v19 = vld [vmem:[%s1982_s0 + $0xc0] sm:$0xff]  ;;  %v79_v20 = vld [vmem:[%s1982_s0 + $0xc8] sm:$0xff] }
   0x8   :  { %545 = vmatpush.bf16.msra.mxu1 %v98_v12  ;;  %1220 = vmatpush.bf16.msra.mxu3 %v98_v12  ;;  %v104_v21 = vld [vmem:[%s1984_s2 + $0x28] sm:$0xff]  ;;  %v102_v22 = vld [vmem:[%s1984_s2 + $0x18] sm:$0xff]  ;;  %v89_v24 = vpack.c.bf16 %v65_v18, %v64_v17  ;;  %v96_v25 = vpack.c.bf16 %v79_v20, %v78_v19  ;;  %v62_v26 = vld [vmem:[%s1982_s0 + $0x40] sm:$0xff] }
   0x9   :  { %v100_v23 = vld [vmem:[%s1984_s2 + $0x8] sm:$0xff]  ;;  %v76_v28 = vld [vmem:[%s1982_s0 + $0xb0] sm:$0xff]  ;;  %v77_v29 = vld [vmem:[%s1982_s0 + $0xb8] sm:$0xff] }
   0xa   :  { %v63_v27 = vld [vmem:[%s1982_s0 + $0x48] sm:$0xff]  ;;  %v95_v31 = vpack.c.bf16 %v77_v29, %v76_v28  ;;  %v60_v32 = vld [vmem:[%s1982_s0 + $0x30] sm:$0xff]  ;;  %v61_v33 = vld [vmem:[%s1982_s0 + $0x38] sm:$0xff] }
   0xb   :  { %461 = vmatpush.bf16.msra.mxu0 %v90_v15  ;;  %1213 = vmatpush.bf16.msra.mxu2 %v90_v15  ;;  %v88_v30 = vpack.c.bf16 %v63_v27, %v62_v26  ;;  %v74_v34 = vld [vmem:[%s1982_s0 + $0xa0] sm:$0xff]  ;;  %v75_v35 = vld [vmem:[%s1982_s0 + $0xa8] sm:$0xff]  ;;  %v106_v37 = vld [vmem:[%s1984_s2 + $0x38] sm:$0xff]  ;;  %v87_v39 = vpack.c.bf16 %v61_v33, %v60_v32 }
   0xc   :  { %546 = vmatpush.bf16.msra.mxu1 %v97_v16  ;;  %1221 = vmatpush.bf16.msra.mxu3 %v97_v16  ;;  %v107_v36 = vld [vmem:[%s1984_s2 + $0x40] sm:$0xff]  ;;  %v105_v38 = vld [vmem:[%s1984_s2 + $0x30] sm:$0xff]  ;;  %v94_v40 = vpack.c.bf16 %v75_v35, %v74_v34  ;;  %v59_v42 = vld [vmem:[%s1982_s0 + $0x28] sm:$0xff] }
   0xd   :  { %156 = vperm.xlu2 %1231, %v104_v21   ;;  %v58_v41 = vld [vmem:[%s1982_s0 + $0x20] sm:$0xff]  ;;  %v72_v43 = vld [vmem:[%s1982_s0 + $0x90] sm:$0xff]  ;;  %v73_v44 = vld [vmem:[%s1982_s0 + $0x98] sm:$0xff] }
   0xe   :  { %146 = vperm.xlu1 %1230, %v102_v22   ;;  %136 = vperm.xlu0 %1229, %v100_v23   ;;  %v86_v45 = vpack.c.bf16 %v59_v42, %v58_v41  ;;  %v93_v46 = vpack.c.bf16 %v73_v44, %v72_v43  ;;  %v56_v47 = vld [vmem:[%s1982_s0 + $0x10] sm:$0xff]  ;;  %v57_v48 = vld [vmem:[%s1982_s0 + $0x18] sm:$0xff]  ;;  %v70_v49 = vld [vmem:[%s1982_s0 + $0x80] sm:$0xff] }
   0xf   :  { %462 = vmatpush.bf16.msra.mxu0 %v89_v24  ;;  %1214 = vmatpush.bf16.msra.mxu2 %v89_v24  ;;  %v71_v50 = vld [vmem:[%s1982_s0 + $0x88] sm:$0xff] }
  0x10   :  { %547 = vmatpush.bf16.msra.mxu1 %v96_v25  ;;  %1222 = vmatpush.bf16.msra.mxu3 %v96_v25 }
  0x13   :  { %463 = vmatpush.bf16.msra.mxu0 %v88_v30  ;;  %1215 = vmatpush.bf16.msra.mxu2 %v88_v30 }
  0x14   :  { %548 = vmatpush.bf16.msra.mxu1 %v95_v31  ;;  %1223 = vmatpush.bf16.msra.mxu3 %v95_v31 }
  0x15   :  { %171 = vperm.xlu2 %1231, %v107_v36  }
  0x16   :  { %166 = vperm.xlu1 %1230, %v106_v37   ;;  %161 = vperm.xlu0 %1229, %v105_v38  }
  0x17   :  { %464 = vmatpush.bf16.msra.mxu0 %v87_v39  ;;  %1216 = vmatpush.bf16.msra.mxu2 %v87_v39 }
  0x18   :  { %549 = vmatpush.bf16.msra.mxu1 %v94_v40  ;;  %1224 = vmatpush.bf16.msra.mxu3 %v94_v40 }
  0x19   :  { %12 = vsyncpa [#allocation4], 0  ;;  %v110_v51 = vld [vmem:[%s1984_s2 + $0x58] sm:$0xff]  ;;  %v109_v52 = vld [vmem:[%s1984_s2 + $0x50] sm:$0xff]  ;;  %v85_v54 = vpack.c.bf16 %v57_v48, %v56_v47  ;;  %v92_v56 = vpack.c.bf16 %v71_v50, %v70_v49  ;;  %vm414_vm0 = vcmask 916480   ;;  %vm868_vm1 = vcmask 64512  }
  0x1a   :  { %v108_v53 = vld [vmem:[%s1984_s2 + $0x48] sm:$0xff]  ;;  %v1182_v55 = vld [vmem:[%s1983_s1 + $0x4] sm:$0xf]  ;;  %v1048_v0 = vld [vmem:[%s1983_s1] sm:$0xf]  ;;  %s1037_s23 = sshll.u32 %s1987_s5, 4  ;;  %s1038_s23 = int_to_ptr.hbm [resolvable:$true] %s1037_s23 }
  0x1b   :  { %465 = vmatpush.bf16.msra.mxu0 %v86_v45  ;;  %1217 = vmatpush.bf16.msra.mxu2 %v86_v45  ;;  %v1050_v57 = vld [vmem:[%s1983_s1 + $0x8] sm:$0xf0]  ;;  %v54_v58 = vld [vmem:[%s1982_s0] sm:$0xff]  ;;  %v1183_v1 = vld [vmem:[%s1983_s1 + $0x4] sm:$0xf0] }
  0x1c   :  { %550 = vmatpush.bf16.msra.mxu1 %v93_v46  ;;  %v55_v59 = vld [vmem:[%s1982_s0 + $0x8] sm:$0xff]  ;;  %1225 = vmatpush.bf16.msra.mxu3 %v93_v46  ;;  %v1198_v60 = vld [vmem:[%s1983_s1 + $0x84] sm:$0xf]  ;;  %v1053_v62 = vor.u32 %v1182_v55, %v1050_v57  ;;  %v1104_v2 = vld [vmem:[%s1983_s1 + $0x70] sm:$0xf]  ;;  %v1049_v8 = vor.u32 %v1183_v1, %v1048_v0 }
  0x1d   :  { %186 = vperm.xlu2 %1231, %v110_v51   ;;  %v1114_v61 = vld [vmem:[%s1983_s1 + $0x88] sm:$0xf0]  ;;  %v84_v63 = vpack.c.bf16 %v55_v59, %v54_v58  ;;  %v1197_v3 = vld [vmem:[%s1983_s1 + $0x74] sm:$0xf0]  ;;  %v113_v5 = vld [vmem:[%s1984_s2 + $0x70] sm:$0xff] }
  0x1e   :  { %181 = vperm.xlu1 %1230, %v109_v52   ;;  %176 = vperm.xlu0 %1229, %v108_v53   ;;  %v1117_v4 = vor.u32 %v1198_v60, %v1114_v61  ;;  %v112_v6 = vld [vmem:[%s1984_s2 + $0x68] sm:$0xff]  ;;  %v111_v7 = vld [vmem:[%s1984_s2 + $0x60] sm:$0xff]  ;;  %v1105_v9 = vor.u32 %v1197_v3, %v1104_v2  ;;  %v114_v12 = vld [vmem:[%s1984_s2 + $0x78] sm:$0xff] }
  0x1f   :  { %466 = vmatpush.bf16.msra.mxu0 %v85_v54  ;;  %1218 = vmatpush.bf16.msra.mxu2 %v85_v54  ;;  %v116_v10 = vld [vmem:[%s1984_s2 + $0x88] sm:$0xff]  ;;  %v115_v11 = vld [vmem:[%s1984_s2 + $0x80] sm:$0xff]  ;;  %v1184_v13 = vld [vmem:[%s1983_s1 + $0x14] sm:$0xf] }
  0x20   :  { %551 = vmatpush.bf16.msra.mxu1 %v92_v56  ;;  %1226 = vmatpush.bf16.msra.mxu3 %v92_v56  ;;  %v1058_v14 = vld [vmem:[%s1983_s1 + $0x18] sm:$0xf0]  ;;  %v1200_v15 = vld [vmem:[%s1983_s1 + $0x94] sm:$0xf]  ;;  %v1056_v18 = vld [vmem:[%s1983_s1 + $0x10] sm:$0xf] }
  0x21   :  { %v1122_v16 = vld [vmem:[%s1983_s1 + $0x98] sm:$0xf0]  ;;  %v1061_v17 = vor.u32 %v1184_v13, %v1058_v14  ;;  %v1185_v19 = vld [vmem:[%s1983_s1 + $0x14] sm:$0xf0]  ;;  %v1112_v20 = vld [vmem:[%s1983_s1 + $0x80] sm:$0xf] }
  0x22   :  { %v1199_v21 = vld [vmem:[%s1983_s1 + $0x84] sm:$0xf0]  ;;  %v1125_v22 = vor.u32 %v1200_v15, %v1122_v16  ;;  %v119_v23 = vld [vmem:[%s1984_s2 + $0xa0] sm:$0xff]  ;;  %v118_v24 = vld [vmem:[%s1984_s2 + $0x98] sm:$0xff]  ;;  %v1057_v26 = vor.u32 %v1185_v19, %v1056_v18 }
  0x23   :  { %1166 = vmatmul.msk.bf16.vlgmr.msra.gmra.mxu1 %vm414_vm0, %v1053_v62  ;;  %467 = vmatpush.bf16.msra.mxu0 %v84_v63  ;;  %v117_v25 = vld [vmem:[%s1984_s2 + $0x90] sm:$0xff]  ;;  %v1113_v27 = vor.u32 %v1199_v21, %v1112_v20  ;;  %v122_v28 = vld [vmem:[%s1984_s2 + $0xb8] sm:$0xff]  ;;  %v120_v30 = vld [vmem:[%s1984_s2 + $0xa8] sm:$0xff] }
  0x24   :  { %1219 = vmatpush.bf16.msra.mxu2 %v84_v63  ;;  %1174 = vmatmul.msk.bf16.vlgmr.msra.gmra.mxu3 %vm414_vm0, %v1117_v4  ;;  %v121_v29 = vld [vmem:[%s1984_s2 + $0xb0] sm:$0xff]  ;;  %v1186_v31 = vld [vmem:[%s1983_s1 + $0x24] sm:$0xf]  ;;  %v1066_v32 = vld [vmem:[%s1983_s1 + $0x28] sm:$0xf0] }
  0x25   :  { %201 = vperm.xlu2 %1231, %v113_v5   ;;  %v1202_v33 = vld [vmem:[%s1983_s1 + $0xa4] sm:$0xf]  ;;  %v1130_v34 = vld [vmem:[%s1983_s1 + $0xa8] sm:$0xf0]  ;;  %v1069_v35 = vor.u32 %v1186_v31, %v1066_v32  ;;  %v1064_v36 = vld [vmem:[%s1983_s1 + $0x20] sm:$0xf] }
  0x26   :  { %196 = vperm.xlu1 %1230, %v112_v6   ;;  %191 = vperm.xlu0 %1229, %v111_v7   ;;  %v1187_v37 = vld [vmem:[%s1983_s1 + $0x24] sm:$0xf0]  ;;  %v1120_v38 = vld [vmem:[%s1983_s1 + $0x90] sm:$0xf]  ;;  %v1201_v39 = vld [vmem:[%s1983_s1 + $0x94] sm:$0xf0]  ;;  %v1133_v40 = vor.u32 %v1202_v33, %v1130_v34 }
  0x27   :  { %468 = vmatmul.bf16.vlgmr.msra.gmra.mxu0 %v1049_v8  ;;  %503 = vmatmul.bf16.vlgmr.msra.gmra.mxu2 %v1105_v9  ;;  %v125_v41 = vld [vmem:[%s1984_s2 + $0xd0] sm:$0xff]  ;;  %v124_v42 = vld [vmem:[%s1984_s2 + $0xc8] sm:$0xff]  ;;  %v123_v43 = vld [vmem:[%s1984_s2 + $0xc0] sm:$0xff]  ;;  %v1065_v44 = vor.u32 %v1187_v37, %v1064_v36  ;;  %v1121_v45 = vor.u32 %v1201_v39, %v1120_v38 }
  0x28   :  { %v128_v46 = vld [vmem:[%s1984_s2 + $0xe8] sm:$0xff]  ;;  %v127_v47 = vld [vmem:[%s1984_s2 + $0xe0] sm:$0xff]  ;;  %v126_v48 = vld [vmem:[%s1984_s2 + $0xd8] sm:$0xff] }
  0x29   :  { %v1188_v49 = vld [vmem:[%s1983_s1 + $0x34] sm:$0xf]  ;;  %v1074_v50 = vld [vmem:[%s1983_s1 + $0x38] sm:$0xf0]  ;;  %v1072_v54 = vld [vmem:[%s1983_s1 + $0x30] sm:$0xf] }
  0x2a   :  { %v1204_v51 = vld [vmem:[%s1983_s1 + $0xb4] sm:$0xf]  ;;  %v1138_v52 = vld [vmem:[%s1983_s1 + $0xb8] sm:$0xf0]  ;;  %v1077_v53 = vor.u32 %v1188_v49, %v1074_v50  ;;  %v1189_v55 = vld [vmem:[%s1983_s1 + $0x34] sm:$0xf0] }
  0x2b   :  { %v1128_v56 = vld [vmem:[%s1983_s1 + $0xa0] sm:$0xf]  ;;  %v1203_v57 = vld [vmem:[%s1983_s1 + $0xa4] sm:$0xf0]  ;;  %v1141_v58 = vor.u32 %v1204_v51, %v1138_v52  ;;  %v660_v59 = vld [vmem:[%s1985_s3 + $0x10] sm:$0xff]  ;;  %v1073_v62 = vor.u32 %v1189_v55, %v1072_v54 }
  0x2c   :  { %v659_v60 = vld [vmem:[%s1985_s3 + $0x8] sm:$0xff]  ;;  %v658_v61 = vld [vmem:[%s1985_s3] sm:$0xff]  ;;  %v1129_v63 = vor.u32 %v1203_v57, %v1128_v56  ;;  %v661_v2 = vld [vmem:[%s1985_s3 + $0x18] sm:$0xff] }
  0x2d   :  { %216 = vperm.xlu2 %1231, %v116_v10   ;;  %v663_v0 = vld [vmem:[%s1985_s3 + $0x28] sm:$0xff]  ;;  %v662_v1 = vld [vmem:[%s1985_s3 + $0x20] sm:$0xff]  ;;  %v1136_v10 = vld [vmem:[%s1983_s1 + $0xb0] sm:$0xf] }
  0x2e   :  { %211 = vperm.xlu1 %1230, %v115_v11   ;;  %206 = vperm.xlu0 %1229, %v114_v12   ;;  %v1190_v3 = vld [vmem:[%s1983_s1 + $0x44] sm:$0xf]  ;;  %v1082_v4 = vld [vmem:[%s1983_s1 + $0x48] sm:$0xf0]  ;;  %v1080_v8 = vld [vmem:[%s1983_s1 + $0x40] sm:$0xf] }
  0x2f   :  { %v1206_v5 = vld [vmem:[%s1983_s1 + $0xc4] sm:$0xf]  ;;  %v1146_v6 = vld [vmem:[%s1983_s1 + $0xc8] sm:$0xf0]  ;;  %v1085_v7 = vor.u32 %v1190_v3, %v1082_v4  ;;  %v1191_v9 = vld [vmem:[%s1983_s1 + $0x44] sm:$0xf0] }
  0x30   :  { %v1205_v11 = vld [vmem:[%s1983_s1 + $0xb4] sm:$0xf0]  ;;  %v1149_v12 = vor.u32 %v1206_v5, %v1146_v6  ;;  %v666_v13 = vld [vmem:[%s1985_s3 + $0x40] sm:$0xff]  ;;  %v664_v15 = vld [vmem:[%s1985_s3 + $0x30] sm:$0xff]  ;;  %v1081_v16 = vor.u32 %v1191_v9, %v1080_v8 }
  0x31   :  { %v665_v14 = vld [vmem:[%s1985_s3 + $0x38] sm:$0xff]  ;;  %v668_v20 = vld [vmem:[%s1985_s3 + $0x50] sm:$0xff]  ;;  %v667_v21 = vld [vmem:[%s1985_s3 + $0x48] sm:$0xff] }
  0x32   :  { %v669_v19 = vld [vmem:[%s1985_s3 + $0x58] sm:$0xff]  ;;  %v1207_v31 = vld [vmem:[%s1983_s1 + $0xc4] sm:$0xf0]  ;;  %v672_v33 = vld [vmem:[%s1985_s3 + $0x70] sm:$0xff] }
  0x33   :  { %1167 = vmatmul.msk.bf16.gmra.mxu1 %vm414_vm0, %v1061_v17  ;;  %v1137_v17 = vor.u32 %v1205_v11, %v1136_v10  ;;  %v671_v34 = vld [vmem:[%s1985_s3 + $0x68] sm:$0xff]  ;;  %v1096_v49 = vld [vmem:[%s1983_s1 + $0x60] sm:$0xf]  ;;  %v1209_v54 = vld [vmem:[%s1983_s1 + $0xd4] sm:$0xf0] }
  0x34   :  { %1175 = vmatmul.msk.bf16.gmra.mxu3 %vm414_vm0, %v1125_v22  ;;  %v1192_v22 = vld [vmem:[%s1983_s1 + $0x54] sm:$0xf]  ;;  %v1195_v52 = vld [vmem:[%s1983_s1 + $0x64] sm:$0xf0]  ;;  %v678_v56 = vld [vmem:[%s1985_s3 + $0xa0] sm:$0xff] }
  0x35   :  { %231 = vperm.xlu2 %1231, %v119_v23   ;;  %v1090_v23 = vld [vmem:[%s1983_s1 + $0x58] sm:$0xf0]  ;;  %v1196_v3 = vld [vmem:[%s1983_s1 + $0x74] sm:$0xf]  ;;  %v1160_v9 = vld [vmem:[%s1983_s1 + $0xe0] sm:$0xf] }
  0x36   :  { %226 = vperm.xlu1 %1230, %v118_v24   ;;  %221 = vperm.xlu0 %1229, %v117_v25   ;;  %v1208_v24 = vld [vmem:[%s1983_s1 + $0xd4] sm:$0xf]  ;;  %v1154_v25 = vld [vmem:[%s1983_s1 + $0xd8] sm:$0xf0]  ;;  %v1211_v10 = vld [vmem:[%s1983_s1 + $0xe4] sm:$0xf0] }
  0x37   :  { %473 = vmatmul.bf16.gmra.mxu0 %v1057_v26  ;;  %508 = vmatmul.bf16.gmra.mxu2 %v1113_v27  ;;  %v1093_v27 = vor.u32 %v1192_v22, %v1090_v23  ;;  %v1157_v32 = vor.u32 %v1208_v24, %v1154_v25  ;;  %v1106_v4 = vld [vmem:[%s1983_s1 + $0x78] sm:$0xf0]  ;;  %v684_v11 = vld [vmem:[%s1985_s3 + $0xd0] sm:$0xff] }
  0x38   :  { %v1109_v6 = vor.u32 %v1196_v3, %v1106_v4 }
  0x3d   :  { %246 = vperm.xlu2 %1231, %v122_v28   ;;  %v1088_v28 = vld [vmem:[%s1983_s1 + $0x50] sm:$0xf] }
  0x3e   :  { %241 = vperm.xlu1 %1230, %v121_v29   ;;  %236 = vperm.xlu0 %1229, %v120_v30   ;;  %v1193_v29 = vld [vmem:[%s1983_s1 + $0x54] sm:$0xf0]  ;;  %v1144_v30 = vld [vmem:[%s1983_s1 + $0xc0] sm:$0xf] }
  0x3f   :  { %v1089_v36 = vor.u32 %v1193_v29, %v1088_v28  ;;  %v1145_v37 = vor.u32 %v1207_v31, %v1144_v30 }
  0x43   :  { %1168 = vmatmul.msk.bf16.gmra.mxu1 %vm414_vm0, %v1069_v35  ;;  %v670_v35 = vld [vmem:[%s1985_s3 + $0x60] sm:$0xff] }
  0x44   :  { %1176 = vmatmul.msk.bf16.gmra.mxu3 %vm414_vm0, %v1133_v40 }
  0x45   :  { %261 = vperm.xlu2 %1231, %v125_v41   ;;  %v675_v41 = vld [vmem:[%s1985_s3 + $0x88] sm:$0xff] }
  0x46   :  { %256 = vperm.xlu1 %1230, %v124_v42   ;;  %251 = vperm.xlu0 %1229, %v123_v43   ;;  %v674_v42 = vld [vmem:[%s1985_s3 + $0x80] sm:$0xff]  ;;  %v673_v43 = vld [vmem:[%s1985_s3 + $0x78] sm:$0xff] }
  0x47   :  { %478 = vmatmul.bf16.gmra.mxu0 %v1065_v44  ;;  %513 = vmatmul.bf16.gmra.mxu2 %v1121_v45  ;;  %v1194_v44 = vld [vmem:[%s1983_s1 + $0x64] sm:$0xf]  ;;  %v1098_v45 = vld [vmem:[%s1983_s1 + $0x68] sm:$0xf0] }
  0x4d   :  { %276 = vperm.xlu2 %1231, %v128_v46   ;;  %v1210_v46 = vld [vmem:[%s1983_s1 + $0xe4] sm:$0xf] }
  0x4e   :  { %271 = vperm.xlu1 %1230, %v127_v47   ;;  %266 = vperm.xlu0 %1229, %v126_v48   ;;  %v1162_v47 = vld [vmem:[%s1983_s1 + $0xe8] sm:$0xf0]  ;;  %v1101_v48 = vor.u32 %v1194_v44, %v1098_v45 }
  0x4f   :  { %v1165_v55 = vor.u32 %v1210_v46, %v1162_v47 }
  0x53   :  { %1169 = vmatmul.msk.bf16.gmra.mxu1 %vm414_vm0, %v1077_v53  ;;  %v1152_v53 = vld [vmem:[%s1983_s1 + $0xd0] sm:$0xf] }
  0x54   :  { %1177 = vmatmul.msk.bf16.gmra.mxu3 %vm414_vm0, %v1141_v58  ;;  %v677_v58 = vld [vmem:[%s1985_s3 + $0x98] sm:$0xff] }
  0x55   :  { %700 = vperm.xlu2 %1231, %v660_v59   ;;  %v676_v59 = vld [vmem:[%s1985_s3 + $0x90] sm:$0xff] }
  0x56   :  { %695 = vperm.xlu1 %1230, %v659_v60   ;;  %690 = vperm.xlu0 %1229, %v658_v61   ;;  %v1097_v60 = vor.u32 %v1195_v52, %v1096_v49  ;;  %v1153_v61 = vor.u32 %v1209_v54, %v1152_v53 }
  0x57   :  { %483 = vmatmul.bf16.gmra.mxu0 %v1073_v62  ;;  %518 = vmatmul.bf16.gmra.mxu2 %v1129_v63 }
  0x5d   :  { %715 = vperm.xlu2 %1231, %v663_v0   ;;  %v681_v0 = vld [vmem:[%s1985_s3 + $0xb8] sm:$0xff] }
  0x5e   :  { %710 = vperm.xlu1 %1230, %v662_v1   ;;  %705 = vperm.xlu0 %1229, %v661_v2   ;;  %v680_v1 = vld [vmem:[%s1985_s3 + $0xb0] sm:$0xff]  ;;  %v679_v2 = vld [vmem:[%s1985_s3 + $0xa8] sm:$0xff] }
  0x5f   :  { %v1634_v18 = vpop.permute.xlu2 %151 }
  0x63   :  { %1170 = vmatmul.msk.bf16.gmra.mxu1 %vm414_vm0, %v1085_v7 }
  0x64   :  { %1178 = vmatmul.msk.bf16.gmra.mxu3 %vm414_vm0, %v1149_v12  ;;  %v683_v12 = vld [vmem:[%s1985_s3 + $0xc8] sm:$0xff] }
  0x65   :  { %730 = vperm.xlu2 %1231, %v666_v13   ;;  %v682_v13 = vld [vmem:[%s1985_s3 + $0xc0] sm:$0xff] }
  0x66   :  { %725 = vperm.xlu1 %1230, %v665_v14   ;;  %720 = vperm.xlu0 %1229, %v664_v15   ;;  %v1161_v14 = vor.u32 %v1211_v10, %v1160_v9 }
  0x67   :  { %488 = vmatmul.bf16.gmra.mxu0 %v1081_v16  ;;  %523 = vmatmul.bf16.gmra.mxu2 %v1137_v17  ;;  %v1657_v26 = vpop.permute.xlu2 %156 }
  0x6d   :  { %745 = vperm.xlu2 %1231, %v669_v19   ;;  %v687_v19 = vld [vmem:[%s1985_s3 + $0xe8] sm:$0xff] }
  0x6e   :  { %740 = vperm.xlu1 %1230, %v668_v20   ;;  %735 = vperm.xlu0 %1229, %v667_v21   ;;  %v686_v20 = vld [vmem:[%s1985_s3 + $0xe0] sm:$0xff]  ;;  %v685_v21 = vld [vmem:[%s1985_s3 + $0xd8] sm:$0xff]  ;;  %s1263_s3 = smov [#allocation3]  }
  0x6f   :  { %v1686_v40 = vpop.permute.xlu2 %171  ;;  %s1035_s20 = sshll.u32 %s1263_s3, 4  ;;  %s1036_s20 = int_to_ptr.vmem [resolvable:$true] %s1035_s20 }
  0x73   :  { %1171 = vmatmul.msk.bf16.gmra.mxu1 %vm414_vm0, %v1093_v27  ;;  %v934_v27 = vld [vmem:[#allocation2] sm:$0x1] }
  0x74   :  { %1179 = vmatmul.msk.bf16.gmra.mxu3 %vm414_vm0, %v1157_v32 }
  0x75   :  { %760 = vperm.xlu2 %1231, %v672_v33  }
  0x76   :  { %755 = vperm.xlu1 %1230, %v671_v34   ;;  %750 = vperm.xlu0 %1229, %v670_v35  }
  0x77   :  { %493 = vmatmul.bf16.gmra.mxu0 %v1089_v36  ;;  %528 = vmatmul.bf16.gmra.mxu2 %v1145_v37  ;;  %v1728_v57 = vpop.permute.xlu2 %186 }
  0x78   :  { %v1682_v38 = vpop.permute.xlu1 %141  ;;  %v1684_v39 = vpop.permute.xlu0 %131 }
  0x7d   :  { %775 = vperm.xlu2 %1231, %v675_v41  }
  0x7e   :  { %770 = vperm.xlu1 %1230, %v674_v42   ;;  %765 = vperm.xlu0 %1229, %v673_v43  }
  0x7f   :  { %v202_v5 = vpop.permute.xlu2 %201 }
  0x80   :  { %v1712_v50 = vpop.permute.xlu1 %146  ;;  %v1714_v51 = vpop.permute.xlu0 %136 }
  0x83   :  { %1172 = vmatmul.msk.bf16.gmra.mxu1 %vm414_vm0, %v1101_v48 }
  0x84   :  { %1180 = vmatmul.msk.bf16.gmra.mxu3 %vm414_vm0, %v1165_v55 }
  0x85   :  { %790 = vperm.xlu2 %1231, %v678_v56  }
  0x86   :  { %785 = vperm.xlu1 %1230, %v677_v58   ;;  %780 = vperm.xlu0 %1229, %v676_v59  }
  0x87   :  { %498 = vmatmul.bf16.gmra.mxu0 %v1097_v60  ;;  %533 = vmatmul.bf16.gmra.mxu2 %v1153_v61  ;;  %v1777_v15 = vpop.permute.xlu2 %216 }
  0x88   :  { %v1738_v62 = vpop.permute.xlu1 %166  ;;  %v1740_v63 = vpop.permute.xlu0 %161 }
  0x8d   :  { %805 = vperm.xlu2 %1231, %v681_v0  }
  0x8e   :  { %800 = vperm.xlu1 %1230, %v680_v1   ;;  %795 = vperm.xlu0 %1229, %v679_v2  }
  0x8f   :  { %v1792_v24 = vpop.permute.xlu2 %231 }
  0x90   :  { %v1757_v7 = vpop.permute.xlu1 %181  ;;  %v1759_v8 = vpop.permute.xlu0 %176 }
  0x93   :  { %1173 = vmatmul.msk.bf16.gmra.mxu1 %vm414_vm0, %v1109_v6 }
  0x95   :  { %820 = vperm.xlu2 %1231, %v684_v11  }
  0x96   :  { %815 = vperm.xlu1 %1230, %v683_v12   ;;  %810 = vperm.xlu0 %1229, %v682_v13  }
  0x97   :  { %538 = vmatmul.bf16.gmra.mxu2 %v1161_v14  ;;  %v1797_v36 = vpop.permute.xlu2 %246 }
  0x98   :  { %v1779_v16 = vpop.permute.xlu1 %196  ;;  %v1781_v17 = vpop.permute.xlu0 %191 }
  0x9d   :  { %835 = vperm.xlu2 %1231, %v687_v19  }
  0x9e   :  { %830 = vperm.xlu1 %1230, %v686_v20   ;;  %825 = vperm.xlu0 %1229, %v685_v21  }
  0xa0   :  { %v553_v22 = vpop.f32.mrf.mxu1  ;;  %v212_v23 = vpop.permute.xlu1 %211 }
  0xa1   :  { %v207_v25 = vpop.permute.xlu0 %206 }
  0xa4   :  { %v469_v28 = vpop.f32.mrf.mxu0 }
  0xa5   :  { %v470_v29 = vadd.f32 %v469_v28, %v1684_v39 }
  0xa6   :  { %937 = vperm.xlu0 %1229, %v934_v27  }
  0xa7   :  { %v554_v30 = vadd.f32 %v553_v22, %v470_v29  ;;  %v593_v34 = vpop.f32.mrf.mxu3 }
  0xa8   :  { %v555_v31 = vpop.f32.mrf.mxu1  ;;  %v1795_v32 = vpop.permute.xlu1 %226 }
  0xa9   :  { %v222_v33 = vpop.permute.xlu0 %221  ;;  %v628_v44 = vmax.f32 %v554_v30, 0.0 }
  0xaa   :  { %v504_v35 = vpop.f32.mrf.mxu2 }
  0xab   :  { %v1799_v37 = vadd.f32 %v504_v35, %v202_v5  ;;  %v961_v54 = vsel %vm868_vm1, %v628_v44, 0.0 }
  0xac   :  { %v471_v41 = vpop.f32.mrf.mxu0 }
  0xad   :  { %v472_v42 = vadd.f32 %v471_v41, %v1714_v51  ;;  %v1810_v51 = vpop.permute.xlu2 %261 }
  0xae   :  { %1988 = vst [vmem:[#allocation6_spill] sm:$0xff] %v1810_v51 }
  0xaf   :  { %v556_v43 = vadd.f32 %v555_v31, %v472_v42  ;;  %v595_v52 = vpop.f32.mrf.mxu3 }
  0xb0   :  { %v558_v45 = vpop.f32.mrf.mxu1  ;;  %v1802_v46 = vpop.permute.xlu1 %241 }
  0xb1   :  { %v1804_v39 = vpop.permute.xlu0 %236  ;;  %v629_v47 = vmax.f32 %v556_v43, 0.0 }
  0xb2   :  { %v506_v48 = vpop.f32.mrf.mxu2 }
  0xb3   :  { %v1806_v49 = vadd.f32 %v506_v48, %v207_v25  ;;  %v962_v53 = vsel %vm868_vm1, %v629_v47, 0.0 }
  0xb4   :  { %v474_v55 = vpop.f32.mrf.mxu0  ;;  %v963_v56 = vadd.f32 %v962_v53, %v961_v54 }
  0xb5   :  { %v475_v58 = vadd.f32 %v474_v55, %v1682_v38  ;;  %v1821_v12 = vpop.permute.xlu2 %276 }
  0xb6   :  { %1989 = vst [vmem:[#allocation7_spill] sm:$0xff] %v1821_v12 }
  0xb7   :  { %v559_v59 = vadd.f32 %v558_v45, %v475_v58  ;;  %v598_v11 = vpop.f32.mrf.mxu3 }
  0xb8   :  { %v560_v60 = vpop.f32.mrf.mxu1  ;;  %v1813_v61 = vpop.permute.xlu1 %256 }
  0xb9   :  { %v630_v0 = vmax.f32 %v559_v59, 0.0  ;;  %v1815_v1 = vpop.permute.xlu0 %251 }
  0xba   :  { %v509_v2 = vpop.f32.mrf.mxu2 }
  0xbb   :  { %v964_v3 = vsel %vm868_vm1, %v630_v0, 0.0  ;;  %v510_v4 = vadd.f32 %v509_v2, %v212_v23 }
  0xbc   :  { %v476_v5 = vpop.f32.mrf.mxu0  ;;  %v965_v6 = vadd.f32 %v964_v3, %v963_v56 }
  0xbd   :  { %v477_v9 = vadd.f32 %v476_v5, %v1712_v50  ;;  %v1819_v10 = vadd.f32 %v593_v34, %v510_v4  ;;  %v701_v35 = vpop.permute.xlu2 %700 }
  0xbe   :  { %v840_v45 = vmul.f32 %v701_v35, %v630_v0 }
  0xbf   :  { %v561_v38 = vadd.f32 %v560_v60, %v477_v9  ;;  %v1832_v30 = vpop.f32.mrf.mxu3 }
  0xc0   :  { %v563_v13 = vpop.f32.mrf.mxu1  ;;  %v1823_v14 = vpop.permute.xlu1 %271 }
  0xc1   :  { %1990 = vst [vmem:[#allocation8_spill] sm:$0xff] %v1823_v14  ;;  %v1825_v19 = vpop.permute.xlu0 %266  ;;  %v631_v20 = vmax.f32 %v561_v38, 0.0 }
  0xc2   :  { %1991 = vst [vmem:[#allocation9_spill] sm:$0xff] %v1825_v19  ;;  %v511_v21 = vpop.f32.mrf.mxu2 }
  0xc3   :  { %v512_v22 = vadd.f32 %v511_v21, %v1777_v15  ;;  %v966_v23 = vsel %vm868_vm1, %v631_v20, 0.0 }
  0xc4   :  { %v479_v25 = vpop.f32.mrf.mxu0  ;;  %v967_v27 = vadd.f32 %v966_v23, %v965_v6 }
  0xc5   :  { %v480_v50 = vadd.f32 %v479_v25, %v1634_v18  ;;  %v1830_v28 = vadd.f32 %v595_v52, %v512_v22 }
  0xc7   :  { %v564_v29 = vadd.f32 %v563_v13, %v480_v50 }
  0xc8   :  { %v565_v31 = vpop.f32.mrf.mxu1  ;;  %v696_v34 = vpop.permute.xlu1 %695 }
  0xc9   :  { %v839_v41 = vmul.f32 %v696_v34, %v629_v47  ;;  %v691_v42 = vpop.permute.xlu0 %690  ;;  %v632_v43 = vmax.f32 %v564_v29, 0.0  ;;  %v872_v47 = vsel %vm868_vm1, %v840_v45, 0.0  ;;  %v716_v29 = vpop.permute.xlu2 %715 }
  0xca   :  { %v838_v48 = vmul.f32 %v691_v42, %v628_v44  ;;  %v514_v15 = vpop.f32.mrf.mxu2 }
  0xcb   :  { %v870_v53 = vsel %vm868_vm1, %v839_v41, 0.0  ;;  %v515_v54 = vadd.f32 %v514_v15, %v222_v33  ;;  %v968_v55 = vsel %vm868_vm1, %v632_v43, 0.0  ;;  %v1844_v33 = vpop.f32.mrf.mxu3 }
  0xcc   :  { %v869_v18 = vsel %vm868_vm1, %v838_v48, 0.0  ;;  %v481_v52 = vpop.f32.mrf.mxu0  ;;  %v1837_v56 = vadd.f32 %v968_v55, %v967_v27 }
  0xcd   :  { %v871_v58 = vadd.f32 %v870_v53, %v869_v18  ;;  %v1839_v59 = vadd.f32 %v598_v11, %v515_v54  ;;  %v482_v55 = vadd.f32 %v481_v52, %v1657_v26 }
  0xcf   :  { %v873_v60 = vadd.f32 %v872_v47, %v871_v58 }
  0xd0   :  { %v568_v2 = vpop.f32.mrf.mxu1  ;;  %v711_v0 = vpop.permute.xlu1 %710 }
  0xd1   :  { %v706_v44 = vpop.permute.xlu0 %705  ;;  %v842_v3 = vmul.f32 %v711_v0, %v632_v43  ;;  %v731_v48 = vpop.permute.xlu2 %730  ;;  %v566_v0 = vadd.f32 %v565_v31, %v482_v55 }
  0xd2   :  { %v841_v4 = vmul.f32 %v706_v44, %v631_v20  ;;  %v1842_v5 = vpop.f32.mrf.mxu2 }
  0xd3   :  { %v876_v13 = vsel %vm868_vm1, %v842_v3, 0.0  ;;  %v1852_v25 = vpop.f32.mrf.mxu3  ;;  %v633_v52 = vmax.f32 %v566_v0, 0.0 }
  0xd4   :  { %v874_v6 = vsel %vm868_vm1, %v841_v4, 0.0  ;;  %v484_v9 = vpop.f32.mrf.mxu0 }
  0xd5   :  { %v875_v38 = vadd.f32 %v874_v6, %v873_v60  ;;  %v485_v18 = vadd.f32 %v484_v9, %v1740_v63  ;;  %v843_v55 = vmul.f32 %v716_v29, %v633_v52 }
  0xd7   :  { %v1848_v11 = vadd.f32 %v876_v13, %v875_v38  ;;  %v569_v44 = vadd.f32 %v568_v2, %v485_v18 }
  0xd8   :  { %v570_v21 = vpop.f32.mrf.mxu1  ;;  %v726_v45 = vpop.permute.xlu1 %725 }
  0xd9   :  { %v721_v42 = vpop.permute.xlu0 %720  ;;  %v746_v6 = vpop.permute.xlu2 %745  ;;  %v634_v63 = vmax.f32 %v569_v44, 0.0 }
  0xda   :  { %v1850_v22 = vpop.f32.mrf.mxu2 }
  0xdb   :  { %v1856_v34 = vpop.f32.mrf.mxu3  ;;  %v844_v18 = vmul.f32 %v721_v42, %v634_v63 }
  0xdc   :  { %v486_v23 = vpop.f32.mrf.mxu0 }
  0xdd   :  { %v487_v47 = vadd.f32 %v486_v23, %v1738_v62  ;;  %v880_v29 = vsel %vm868_vm1, %v844_v18, 0.0 }
  0xdf   :  { %v571_v13 = vadd.f32 %v570_v21, %v487_v47 }
  0xe0   :  { %v573_v27 = vpop.f32.mrf.mxu1  ;;  %v741_v3 = vpop.permute.xlu1 %740 }
  0xe1   :  { %v736_v60 = vpop.permute.xlu0 %735  ;;  %v635_v31 = vmax.f32 %v571_v13, 0.0  ;;  %v1878_v0 = vpop.permute.xlu2 %760 }
  0xe2   :  { %v1854_v20 = vpop.f32.mrf.mxu2 }
  0xe3   :  { %v1860_v53 = vpop.f32.mrf.mxu3  ;;  %v845_v51 = vmul.f32 %v726_v45, %v635_v31 }
  0xe4   :  { %v489_v50 = vpop.f32.mrf.mxu0 }
  0xe5   :  { %v490_v38 = vadd.f32 %v489_v50, %v1686_v40  ;;  %v970_v50 = vsel %vm868_vm1, %v633_v52, 0.0 }
  0xe6   :  { %v971_v42 = vadd.f32 %v970_v50, %v1837_v56 }
  0xe7   :  { %v574_v19 = vadd.f32 %v573_v27, %v490_v38 }
  0xe8   :  { %v575_v35 = vpop.f32.mrf.mxu1 }
  0xe9   :  { %v751_v40 = vpop.permute.xlu0 %750  ;;  %v636_v47 = vmax.f32 %v574_v19, 0.0  ;;  %v974_v19 = vsel %vm868_vm1, %v635_v31, 0.0 }
  0xea   :  { %v1858_v41 = vpop.f32.mrf.mxu2 }
  0xeb   :  { %v1870_v14 = vpop.f32.mrf.mxu3  ;;  %v846_v45 = vmul.f32 %v731_v48, %v636_v47  ;;  %v976_v52 = vsel %vm868_vm1, %v636_v47, 0.0 }
  0xec   :  { %v491_v43 = vpop.f32.mrf.mxu0  ;;  %1992 = vst [vmem:[#allocation10_spill] sm:$0xff] %v1870_v14 }
  0xed   :  { %v492_v26 = vadd.f32 %v491_v43, %v1759_v8  ;;  %v756_v8 = vpop.permute.xlu1 %755 }
  0xef   :  { %v576_v2 = vadd.f32 %v575_v35, %v492_v26 }
  0xf0   :  { %v578_v15 = vpop.f32.mrf.mxu1 }
  0xf1   :  { %v637_v27 = vmax.f32 %v576_v2, 0.0 }
  0xf2   :  { %v1862_v54 = vpop.f32.mrf.mxu2 }
  0xf3   :  { %v1884_v44 = vpop.f32.mrf.mxu3  ;;  %v978_v48 = vsel %vm868_vm1, %v637_v27, 0.0 }
  0xf4   :  { %v494_v58 = vpop.f32.mrf.mxu0 }
  0xf5   :  { %v495_v62 = vadd.f32 %v494_v58, %v1757_v7  ;;  %v972_v7 = vsel %vm868_vm1, %v634_v63, 0.0  ;;  %v847_v63 = vmul.f32 %v736_v60, %v637_v27 }
  0xf6   :  { %v973_v26 = vadd.f32 %v972_v7, %v971_v42 }
  0xf7   :  { %v579_v14 = vadd.f32 %v578_v15, %v495_v62 }
  0xf8   :  { %v580_v4 = vpop.f32.mrf.mxu1  ;;  %v975_v2 = vadd.f32 %v974_v19, %v973_v26 }
  0xf9   :  { %v638_v15 = vmax.f32 %v579_v14, 0.0 }
  0xfa   :  { %v1868_v12 = vpop.f32.mrf.mxu2  ;;  %v977_v18 = vadd.f32 %v976_v52, %v975_v2 }
  0xfb   :  { %v848_v14 = vmul.f32 %v741_v3, %v638_v15  ;;  %v980_v60 = vsel %vm868_vm1, %v638_v15, 0.0 }
  0xfc   :  { %v496_v9 = vpop.f32.mrf.mxu0  ;;  %v979_v7 = vadd.f32 %v978_v48, %v977_v18 }
  0xfd   :  { %v497_v23 = vadd.f32 %v496_v9, %v1728_v57  ;;  %v878_v57 = vsel %vm868_vm1, %v843_v55, 0.0  ;;  %v884_v55 = vsel %vm868_vm1, %v846_v45, 0.0  ;;  %v888_v42 = vsel %vm868_vm1, %v848_v14, 0.0 }
  0xfe   :  { %v879_v13 = vadd.f32 %v878_v57, %v1848_v11  ;;  %v766_v11 = vpop.permute.xlu0 %765  ;;  %v981_v45 = vadd.f32 %v980_v60, %v979_v7 }
  0xff   :  { %v581_v35 = vadd.f32 %v580_v4, %v497_v23  ;;  %v882_v4 = vsel %vm868_vm1, %v845_v51, 0.0  ;;  %v886_v51 = vsel %vm868_vm1, %v847_v63, 0.0 }
 0x100   :  { %v583_v21 = vpop.f32.mrf.mxu1  ;;  %v881_v56 = vadd.f32 %v880_v29, %v879_v13  ;;  %v776_v29 = vpop.permute.xlu2 %775 }
 0x101   :  { %v639_v9 = vmax.f32 %v581_v35, 0.0  ;;  %v771_v35 = vpop.permute.xlu1 %770 }
 0x102   :  { %v1876_v43 = vpop.f32.mrf.mxu2 }
 0x103   :  { %v849_v47 = vmul.f32 %v746_v6, %v639_v9  ;;  %v982_v3 = vsel %vm868_vm1, %v639_v9, 0.0 }
 0x104   :  { %v499_v58 = vpop.f32.mrf.mxu0 }
 0x105   :  { %v500_v38 = vadd.f32 %v499_v58, %v1781_v17  ;;  %v883_v17 = vadd.f32 %v882_v4, %v881_v56  ;;  %v890_v13 = vsel %vm868_vm1, %v849_v47, 0.0  ;;  %v983_v4 = vadd.f32 %v982_v3, %v981_v45 }
 0x106   :  { %v781_v48 = vpop.permute.xlu0 %780 }
 0x107   :  { %v584_v62 = vadd.f32 %v583_v21, %v500_v38  ;;  %v885_v21 = vadd.f32 %v884_v55, %v883_v17  ;;  %v1900_v38 = vpop.f32.mrf.mxu3 }
 0x108   :  { %v585_v23 = vpop.f32.mrf.mxu1 }
 0x109   :  { %v640_v31 = vmax.f32 %v584_v62, 0.0  ;;  %v887_v19 = vadd.f32 %v886_v51, %v885_v21  ;;  %v786_v60 = vpop.permute.xlu1 %785  ;;  %v791_v21 = vpop.permute.xlu2 %790 }
 0x10a   :  { %v1893_v50 = vpop.f32.mrf.mxu2 }
 0x10b   :  { %v850_v27 = vmul.f32 %v751_v40, %v640_v31  ;;  %v984_v6 = vsel %vm868_vm1, %v640_v31, 0.0  ;;  %v889_v26 = vadd.f32 %v888_v42, %v887_v19  ;;  %v645_v19 = vmax.f32 %v1830_v28, 0.0 }
 0x10c   :  { %v501_v57 = vpop.f32.mrf.mxu0  ;;  %v985_v56 = vadd.f32 %v984_v6, %v983_v4  ;;  %v527_v28 = vadd.f32 %v1862_v54, %v1797_v36 }
 0x10d   :  { %v502_v58 = vadd.f32 %v501_v57, %v1779_v16  ;;  %v892_v63 = vsel %vm868_vm1, %v850_v27, 0.0  ;;  %v891_v40 = vadd.f32 %v890_v13, %v889_v26  ;;  %v520_v57 = vadd.f32 %v1850_v22, %v1792_v24 }
 0x10e   :  { %v522_v24 = vadd.f32 %v1854_v20, %v1804_v39  ;;  %v525_v22 = vadd.f32 %v1858_v41, %v1802_v46 }
 0x10f   :  { %v586_v15 = vadd.f32 %v585_v23, %v502_v58  ;;  %v893_v14 = vadd.f32 %v892_v63, %v891_v40  ;;  %v1917_v3 = vpop.f32.mrf.mxu3  ;;  %v644_v58 = vmax.f32 %v1819_v10, 0.0  ;;  %v611_v40 = vadd.f32 %v1860_v53, %v527_v28 }
 0x110   :  { %v588_v52 = vpop.f32.mrf.mxu1  ;;  %v606_v46 = vadd.f32 %v1852_v25, %v522_v24 }
 0x111   :  { %v641_v62 = vmax.f32 %v586_v15, 0.0  ;;  %v589_v9 = vadd.f32 %v588_v52, %v1799_v37  ;;  %v854_v6 = vmul.f32 %v771_v35, %v644_v58  ;;  %v992_v10 = vsel %vm868_vm1, %v644_v58, 0.0  ;;  %v801_v41 = vpop.permute.xlu1 %800 }
 0x112   :  { %v1907_v18 = vpop.f32.mrf.mxu2  ;;  %v855_v52 = vmul.f32 %v776_v29, %v645_v19  ;;  %v530_v29 = vadd.f32 %v1868_v12, %v1815_v1  ;;  %v1993_v12 = vld [vmem:[#allocation6_spill] sm:$0xff] }
 0x113   :  { %v851_v16 = vmul.f32 %v756_v8, %v641_v62  ;;  %v986_v2 = vsel %vm868_vm1, %v641_v62, 0.0  ;;  %v642_v55 = vmax.f32 %v589_v9, 0.0  ;;  %v517_v8 = vadd.f32 %v1842_v5, %v1795_v32  ;;  %v806_v9 = vpop.permute.xlu2 %805 }
 0x114   :  { %v987_v17 = vadd.f32 %v986_v2, %v985_v56  ;;  %v646_v32 = vmax.f32 %v1839_v59, 0.0  ;;  %v604_v5 = vadd.f32 %v1844_v33, %v520_v57  ;;  %v994_v33 = vsel %vm868_vm1, %v645_v19, 0.0 }
 0x115   :  { %v894_v23 = vsel %vm868_vm1, %v851_v16, 0.0  ;;  %v852_v31 = vmul.f32 %v1878_v0, %v642_v55  ;;  %v988_v51 = vsel %vm868_vm1, %v642_v55, 0.0  ;;  %v601_v45 = vadd.f32 %v1832_v30, %v517_v8  ;;  %v796_v30 = vpop.permute.xlu0 %795  ;;  %v1994_v8 = vld [vmem:[#allocation10_spill] sm:$0xff] }
 0x116   :  { %v895_v47 = vadd.f32 %v894_v23, %v893_v14  ;;  %v989_v37 = vadd.f32 %v988_v51, %v987_v17  ;;  %v648_v20 = vmax.f32 %v604_v5, 0.0  ;;  %v996_v63 = vsel %vm868_vm1, %v646_v32, 0.0 }
 0x117   :  { %v896_v7 = vsel %vm868_vm1, %v852_v31, 0.0  ;;  %v647_v4 = vmax.f32 %v601_v45, 0.0  ;;  %v609_v62 = vadd.f32 %v1856_v34, %v525_v22  ;;  %v900_v36 = vsel %vm868_vm1, %v854_v6, 0.0  ;;  %v623_v2 = vpop.f32.mrf.mxu3  ;;  %v1996_v22 = vld [vmem:[#allocation8_spill] sm:$0xff] }
 0x118   :  { %v897_v42 = vadd.f32 %v896_v7, %v895_v47  ;;  %v590_v27 = vpop.f32.mrf.mxu1  ;;  %v856_v54 = vmul.f32 %v781_v48, %v646_v32  ;;  %v902_v55 = vsel %vm868_vm1, %v855_v52, 0.0  ;;  %v532_v34 = vadd.f32 %v1876_v43, %v1813_v61 }
 0x119   :  { %v591_v0 = vadd.f32 %v590_v27, %v1806_v49  ;;  %v998_v25 = vsel %vm868_vm1, %v647_v4, 0.0  ;;  %v857_v14 = vmul.f32 %v786_v60, %v647_v4  ;;  %v858_v17 = vmul.f32 %v791_v21, %v648_v20  ;;  %v1995_v21 = vld [vmem:[#allocation9_spill] sm:$0xff] }
 0x11a   :  { %v539_v59 = vpop.f32.mrf.mxu2  ;;  %v649_v23 = vmax.f32 %v606_v46, 0.0  ;;  %v1000_v53 = vsel %vm868_vm1, %v648_v20, 0.0  ;;  %v650_v51 = vmax.f32 %v609_v62, 0.0  ;;  %v904_v1 = vsel %vm868_vm1, %v856_v54, 0.0 }
 0x11b   :  { %v643_v13 = vmax.f32 %v591_v0, 0.0  ;;  %v535_v47 = vadd.f32 %v1893_v50, %v1993_v12  ;;  %v614_v7 = vadd.f32 %v1994_v8, %v530_v29  ;;  %v616_v43 = vadd.f32 %v1884_v44, %v532_v34  ;;  %v821_v52 = vpop.permute.xlu2 %820 }
 0x11c   :  { %v859_v61 = vmul.f32 %v796_v30, %v649_v23  ;;  %v537_v27 = vadd.f32 %v1907_v18, %v1995_v21  ;;  %v908_v0 = vsel %vm868_vm1, %v858_v17, 0.0  ;;  %v1002_v58 = vsel %vm868_vm1, %v649_v23, 0.0 }
 0x11d   :  { %v853_v15 = vmul.f32 %v766_v11, %v643_v13  ;;  %v990_v49 = vsel %vm868_vm1, %v643_v13, 0.0  ;;  %v811_v19 = vpop.permute.xlu0 %810  ;;  %v1004_v32 = vsel %vm868_vm1, %v650_v51, 0.0  ;;  %v860_v5 = vmul.f32 %v801_v41, %v650_v51 }
 0x11e   :  { %v991_v26 = vadd.f32 %v990_v49, %v989_v37  ;;  %v651_v37 = vmax.f32 %v611_v40, 0.0  ;;  %v619_v24 = vadd.f32 %v1900_v38, %v535_v47  ;;  %v540_v6 = vadd.f32 %v539_v59, %v1996_v22  ;;  %v816_v49 = vpop.permute.xlu1 %815 }
 0x11f   :  { %v898_v39 = vsel %vm868_vm1, %v853_v15, 0.0  ;;  %v652_v44 = vmax.f32 %v614_v7, 0.0  ;;  %v910_v28 = vsel %vm868_vm1, %v859_v61, 0.0  ;;  %v653_v30 = vmax.f32 %v616_v43, 0.0  ;;  %v625_v38 = vpop.f32.mrf.mxu3 }
 0x120   :  { %v899_v11 = vadd.f32 %v898_v39, %v897_v42  ;;  %v993_v35 = vadd.f32 %v992_v10, %v991_v26  ;;  %v906_v42 = vsel %vm868_vm1, %v857_v14, 0.0  ;;  %v861_v15 = vmul.f32 %v806_v9, %v651_v37 }
 0x121   :  { %v621_v26 = vadd.f32 %v1917_v3, %v537_v27  ;;  %v1006_v39 = vsel %vm868_vm1, %v651_v37, 0.0  ;;  %v912_v59 = vsel %vm868_vm1, %v860_v5, 0.0  ;;  %v862_v41 = vmul.f32 %v811_v19, %v652_v44 }
 0x122   :  { %v901_v56 = vadd.f32 %v900_v36, %v899_v11  ;;  %v995_v16 = vadd.f32 %v994_v33, %v993_v35  ;;  %v541_v13 = vpop.f32.mrf.mxu2  ;;  %v1997_v33 = vld [vmem:[#allocation7_spill] sm:$0xff]  ;;  %v654_v11 = vmax.f32 %v619_v24, 0.0  ;;  %v624_v35 = vadd.f32 %v623_v2, %v540_v6 }
 0x123   :  { %v542_v4 = vadd.f32 %v541_v13, %v1997_v33  ;;  %v1008_v54 = vsel %vm868_vm1, %v652_v44, 0.0  ;;  %v863_v3 = vmul.f32 %v816_v49, %v653_v30  ;;  %v655_v9 = vmax.f32 %v621_v26, 0.0 }
 0x124   :  { %v903_v48 = vadd.f32 %v902_v55, %v901_v56  ;;  %v997_v31 = vadd.f32 %v996_v63, %v995_v16  ;;  %v914_v63 = vsel %vm868_vm1, %v861_v15, 0.0  ;;  %v916_v16 = vsel %vm868_vm1, %v862_v41, 0.0 }
 0x125   :  { %v626_v40 = vadd.f32 %v625_v38, %v542_v4  ;;  %v656_v55 = vmax.f32 %v624_v35, 0.0  ;;  %v826_v14 = vpop.permute.xlu0 %825  ;;  %v918_v17 = vsel %vm868_vm1, %v863_v3, 0.0  ;;  %v1010_v43 = vsel %vm868_vm1, %v653_v30, 0.0 }
 0x126   :  { %v905_v57 = vadd.f32 %v904_v1, %v903_v48  ;;  %v999_v60 = vadd.f32 %v998_v25, %v997_v31  ;;  %v864_v25 = vmul.f32 %v821_v52, %v654_v11  ;;  %v865_v2 = vmul.f32 %v826_v14, %v655_v9  ;;  %v831_v48 = vpop.permute.xlu1 %830  ;;  %v836_v1 = vpop.permute.xlu2 %835 }
 0x127   :  { %v657_v23 = vmax.f32 %v626_v40, 0.0  ;;  %v866_v51 = vmul.f32 %v831_v48, %v656_v55  ;;  %v1016_v15 = vsel %vm868_vm1, %v656_v55, 0.0 }
 0x128   :  { %v907_v45 = vadd.f32 %v906_v42, %v905_v57  ;;  %v1001_v50 = vadd.f32 %v1000_v53, %v999_v60  ;;  %v920_v53 = vsel %vm868_vm1, %v864_v25, 0.0  ;;  %v922_v47 = vsel %vm868_vm1, %v865_v2, 0.0 }
 0x129   :  { %v867_v37 = vmul.f32 %v836_v1, %v657_v23  ;;  %v924_v7 = vsel %vm868_vm1, %v866_v51, 0.0 }
 0x12a   :  { %v909_v10 = vadd.f32 %v908_v0, %v907_v45  ;;  %v1003_v18 = vadd.f32 %v1002_v58, %v1001_v50  ;;  %v1012_v58 = vsel %vm868_vm1, %v654_v11, 0.0 }
 0x12b   :  { %v926_v60 = vsel %vm868_vm1, %v867_v37, 0.0 }
 0x12c   :  { %v911_v20 = vadd.f32 %v910_v28, %v909_v10  ;;  %v1005_v46 = vadd.f32 %v1004_v32, %v1003_v18  ;;  %v1014_v32 = vsel %vm868_vm1, %v655_v9, 0.0  ;;  %v1018_v10 = vsel %vm868_vm1, %v657_v23, 0.0 }
 0x12d   :  { %v938_v50 = vpop.permute.xlu0 %937 }
 0x12e   :  { %v913_v62 = vadd.f32 %v912_v59, %v911_v20  ;;  %v1007_v36 = vadd.f32 %v1006_v39, %v1005_v46  ;;  %v940_v5 = vperm.slane %v938_v50, 0 }
 0x130   :  { %v915_v29 = vadd.f32 %v914_v63, %v913_v62  ;;  %v1009_v56 = vadd.f32 %v1008_v54, %v1007_v36 }
 0x132   :  { %v917_v34 = vadd.f32 %v916_v16, %v915_v29  ;;  %v1011_v21 = vadd.f32 %v1010_v43, %v1009_v56 }
 0x134   :  { %v919_v31 = vadd.f32 %v918_v17, %v917_v34  ;;  %v1013_v19 = vadd.f32 %v1012_v58, %v1011_v21 }
 0x136   :  { %v921_v12 = vadd.f32 %v920_v53, %v919_v31  ;;  %v1015_v24 = vadd.f32 %v1014_v32, %v1013_v19 }
 0x138   :  { %v923_v8 = vadd.f32 %v922_v47, %v921_v12  ;;  %v1017_v44 = vadd.f32 %v1016_v15, %v1015_v24 }
 0x13a   :  { %v925_v57 = vadd.f32 %v924_v7, %v923_v8  ;;  %v1019_v18 = vadd.f32 %v1018_v10, %v1017_v44 }
 0x13c   :  { %v927_v42 = vadd.f32 %v926_v60, %v925_v57  ;;  %v1020_v30 = vrot.slane %v1019_v18, 4 }
 0x13e   :  { %v928_v61 = vrot.slane %v927_v42, 4  ;;  %v1021_v33 = vadd.f32 %v1020_v30, %v1019_v18 }
 0x140   :  { %v929_v27 = vadd.f32 %v928_v61, %v927_v42  ;;  %v1022_v4 = vrot.slane %v1021_v33, 2 }
 0x142   :  { %v930_v0 = vrot.slane %v929_v27, 2  ;;  %v1023_v20 = vadd.f32 %v1022_v4, %v1021_v33 }
 0x144   :  { %v931_v45 = vadd.f32 %v930_v0, %v929_v27  ;;  %v1024_v35 = vrot.slane %v1023_v20, 1 }
 0x146   :  { %v932_v13 = vrot.slane %v931_v45, 1  ;;  %v1025_v54 = vadd.f32 %v1024_v35, %v1023_v20 }
 0x148   :  { %v933_v22 = vadd.f32 %v932_v13, %v931_v45 }
 0x14a   :  { %v941_v6 = vadd.f32 %v940_v5, %v933_v22 }
 0x14c   :  { %v1181_v49 = vmul.f32 -1.442695, %v941_v6 }
 0x14e   :  { %1232 = vpow2.f32 %v1181_v49 }
 0x154   :  { %v1233_v28 = vpop.eup %1232 }
 0x155   :  { %v945_v26 = vadd.f32 1.0, %v1233_v28 }
 0x157   :  { %1234 = vrcp.f32 %v945_v26  ;;  %v957_v38 = vand.u32 2147483648, %v945_v26  ;;  %v955_v41 = vand.u32 2147483647, %v945_v26  ;;  %vm951_vm3 = vweird.f32 %v945_v26 }
 0x159   :  { %v958_v63 = vor.u32 1.1754944e-38, %v957_v38  ;;  %vm956_vm5 = vcmp.eq.f32.partialorder %v955_v41, 8.507059e+37 }
 0x15d   :  { %v1235_v52 = vpop.eup %1234 }
 0x15e   :  { %v947_v39 = vmul.f32 %v1235_v52, %v945_v26  ;;  %vm952_vm2 = vweird.f32 %v1235_v52 }
 0x15f   :  { %vm953_vm4 = vmor %vm951_vm3, %vm952_vm2 }
 0x160   :  { %v948_v46 = vsub.f32 1.0, %v947_v39 }
 0x162   :  { %v949_v59 = vmul.f32 %v1235_v52, %v948_v46 }
 0x164   :  { %v950_v11 = vadd.f32 %v1235_v52, %v949_v59 }
 0x166   :  { %v954_v62 = vsel %vm953_vm4, %v1235_v52, %v950_v11 }
 0x167   :  { %v959_v36 = vsel %vm956_vm5, %v958_v63, %v954_v62 }
 0x168   :  { %v1026_v3 = vadd.f32 1.0, %v959_v36 }
 0x16a   :  { %v1027_v9 = vmul.f32 %v1026_v3, %v1025_v54 }
 0x16c   :  { %v1028_v40 = vmul.f32 0.125, %v1027_v9 }
 0x16e   :  { %1029 = vst.msk [vmem:[#allocation3] sm:$0xff] %vm868_vm1, %v1028_v40 }
 0x16f   :  { %1040 = dma.vmem_to_hbm [thread:$0]  %s1036_s20, 128, %s1038_s23, [#allocation4]  }
 0x170   :  { %1260 = dma.done.wait [#allocation4], 128  }
 0x171   :  { %1261 = vsyncadd [#allocation4], 4294967168 }
 0x172   :  { %1045 = vsyncpa [#allocation4], 1 }

</bundles_post_ra>
